<compile_context>
chip_gen: v7x
topology: tpu7x:2x2x1
jax: 0.10.0
libtpu: 0.0.40
codegen_flags: <defaults>
</compile_context>

<pallas_src>
import functools
import math

import jax
import jax.numpy as jnp
from jax.experimental import pallas as pl
from jax.experimental.pallas import tpu as pltpu

_LANES = 128
_TILE_ROWS = 2048        # 2048 x 128 x 4 B = 1 MiB per f32 block (v5e/v7x-safe, lane-dense)
_MIN_SPLIT_ROWS = 1024   # below this, one grid step (splitting is pure overhead)
_N_HASH = 3              # 3 hashes -> 6 x 16-bit uniforms per element (Irwin-Hall k=6)
_GOLDEN = 0x9E3779B9     # golden-ratio constant for seed stream separation

# Version-robust CompilerParams lookup (dataclass was renamed across jax releases).
_CompilerParams = getattr(pltpu, "CompilerParams", None) or getattr(
    pltpu, "TPUCompilerParams", None
)


def _wang_hash_u32(x):
    """Wang integer hash on uint32 vregs (native logical shifts, modular multiply)."""
    x = (x ^ 61) ^ (x >> 16)
    x = x * 9
    x = x ^ (x >> 4)
    x = x * 668265261          # 0x27D4EB2D
    x = x ^ (x >> 15)
    return x


def _noise_kernel(seed_ref, o_ref, *, scale, offset, n_hash, tile_rows):
    tr, lanes = o_ref.shape
    tile = pl.program_id(0)

    # Global element index: unique across the whole array and independent of the tiling,
    # so different grid steps / TensorCores never repeat a noise block and the result is
    # deterministic for a given seed regardless of tile size.  Everything is uint32, so
    # arithmetic is well-defined modular (no signed-overflow reliance).
    row_u = (jax.lax.broadcasted_iota(jnp.int32, (tr, lanes), 0)
             + tile * tile_rows).astype(jnp.uint32)
    col_u = jax.lax.broadcasted_iota(jnp.int32, (tr, lanes), 1).astype(jnp.uint32)
    seed_u = seed_ref[0].astype(jnp.uint32)          # pre-mixed in the wrapper
    counter0 = (row_u * lanes + col_u) * n_hash + seed_u

    # Irwin-Hall / CLT: sum of 2*n_hash 16-bit uniforms -> approx N(0,1) after affine
    # normalization.  Pure VPU integer work (no EUP transcendentals -- v5e-friendly).
    acc = jnp.zeros((tr, lanes), jnp.uint32)
    for j in range(n_hash):
        h = _wang_hash_u32(counter0 + j)
        acc = acc + (h & 0xFFFF) + (h >> 16)

    # acc <= n_hash*2*65535 < 2^31, so the int32 hop before the float convert is exact.
    acc_f = acc.astype(jnp.int32).astype(jnp.float32)
    # Single fused epilogue: (acc - mean) / sigma * std  ==  acc * scale + offset.
    o_ref[...] = (acc_f * jnp.float32(scale) + jnp.float32(offset)).astype(o_ref.dtype)


def gaussian_noise(x, *, seed, std=0.01, training=True):
    """Pallas implementation of GaussianNoise.forward (only x.shape / x.dtype is used)."""
    if not training:
        # Eval path: no kernel launch -- let XLA fuse / constant-fold the zeros.
        return jnp.zeros(x.shape, x.dtype)

    total = x.size
    rows = max(pl.cdiv(total, _LANES), 1)
    rows8 = pl.cdiv(rows, 8) * 8                      # sublane alignment

    # Tile selection: tiny arrays -> one block; mid-sized -> exactly 2 blocks so both v7x
    # TensorCores get work ("parallel" row axis); large -> 1 MiB blocks.
    if rows8 <= _MIN_SPLIT_ROWS:
        tile_rows = rows8
    elif rows8 <= 2 * _TILE_ROWS:
        tile_rows = pl.cdiv(pl.cdiv(rows8, 2), 8) * 8
    else:
        tile_rows = _TILE_ROWS
    grid_n = pl.cdiv(rows8, tile_rows)

    # Pre-mix the seed with the golden-ratio constant (uint32, modular) so different seeds
    # map to well-separated counter streams; stored as int32 bits for the SMEM prefetch ref.
    seed_mixed = jnp.asarray([seed], dtype=jnp.int32).astype(jnp.uint32) * jnp.uint32(_GOLDEN)
    seed_arr = jax.lax.bitcast_convert_type(seed_mixed, jnp.int32)

    # Fold std into the CLT normalization constants at trace time (1 mul + 1 add epilogue).
    k = 2 * _N_HASH
    sigma = math.sqrt(k * (65536.0 ** 2 - 1.0) / 12.0)
    scale = float(std) / sigma
    offset = -(k * 65535.0 / 2.0) * scale

    pallas_kwargs = {}
    if _CompilerParams is not None:
        # Row axis is fully independent -> "parallel" lets v7x's 2 TensorCores split it.
        pallas_kwargs["compiler_params"] = _CompilerParams(
            dimension_semantics=("parallel",)
        )

    out2d = pl.pallas_call(
        functools.partial(
            _noise_kernel,
            scale=scale,
            offset=offset,
            n_hash=_N_HASH,
            tile_rows=tile_rows,
        ),
        out_shape=jax.ShapeDtypeStruct((rows8, _LANES), x.dtype),
        grid_spec=pltpu.PrefetchScalarGridSpec(
            num_scalar_prefetch=1,
            grid=(grid_n,),
            in_specs=[],
            # Ragged last block (if rows8 % tile_rows != 0) is masked by Pallas; no extra copy.
            out_specs=pl.BlockSpec((tile_rows, _LANES), lambda i, seed: (i, 0)),
        ),
        **pallas_kwargs,
    )(seed_arr)

    if total == rows8 * _LANES:
        # Fast path: padded 2-D layout matches x.size exactly -> pure reshape, no slice copy.
        return out2d.reshape(x.shape)
    return out2d.reshape(-1)[:total].reshape(x.shape)


if __name__ == "__main__":
    key = jax.random.PRNGKey(0)
    # Small NCHW input consistent with a denoising-module feature map.
    x = jax.random.normal(key, (2, 4, 16, 16), dtype=jnp.float32)
    std = 0.01

    # Training path: Gaussian noise * std (independent of x values, like randn_like).
    noise = gaussian_noise(x, seed=0, std=std, training=True)
    noise = jax.block_until_ready(noise)
    assert noise.shape == x.shape and noise.dtype == x.dtype
    assert bool(jnp.all(jnp.isfinite(noise)))

    # Statistical sanity: zero-ish mean, std within a loose band around `std`.
    emp_std = float(jnp.std(noise))
    emp_mean = float(jnp.mean(noise))
    assert 0.5 * std < emp_std < 1.5 * std, emp_std
    assert abs(emp_mean) < 0.5 * std, emp_mean

    # Determinism: same seed -> same noise.
    noise_again = jax.block_until_ready(gaussian_noise(x, seed=0, std=std, training=True))
    assert bool(jnp.all(noise == noise_again))

    # Different seed -> different noise.
    noise_other = jax.block_until_ready(gaussian_noise(x, seed=1, std=std, training=True))
    assert not bool(jnp.all(noise == noise_other))

    # Eval path: zeros_like(x).
    zeros = gaussian_noise(x, seed=0, std=std, training=False)
    zeros = jax.block_until_ready(zeros)
    assert zeros.shape == x.shape and zeros.dtype == x.dtype
    assert bool(jnp.all(zeros == 0))

    print("KERNEL_OK")
</pallas_src>

<mosaic_0001>
module attributes {stable_mosaic.version = 11 : i64} {
  func.func @_noise_kernel(%arg0: i32, %arg1: memref<1xi32, #tpu.memory_space<smem>>, %arg2: memref<16x128xf32, #tpu.memory_space<vmem>>) attributes {dimension_semantics = [#tpu.dimension_semantics<parallel>], iteration_bounds = array<i64: 1>, scalar_prefetch = 1 : i64, scratch_operands = 0 : i64, tpu.core_type = #tpu.core_type<tc>, window_params = [{transform_indices = @transform_0, window_bounds = array<i64: 16, 128>}]} {
    %0 = tpu.iota {dimensions = array<i32: 0>} : vector<16x128xi32>
    %c16_i32 = arith.constant 16 : i32
    %1 = arith.muli %arg0, %c16_i32 : i32
    %2 = vector.broadcast %1 : i32 to vector<16x128xi32>
    %3 = arith.addi %0, %2 : vector<16x128xi32>
    %4 = tpu.iota {dimensions = array<i32: 1>} : vector<16x128xi32>
    %c0 = arith.constant 0 : index
    %5 = memref.load %arg1[%c0] : memref<1xi32, #tpu.memory_space<smem>>
    %c128_i32 = arith.constant 128 : i32
    %6 = vector.broadcast %c128_i32 : i32 to vector<16x128xi32>
    %7 = arith.muli %3, %6 : vector<16x128xi32>
    %8 = arith.addi %7, %4 : vector<16x128xi32>
    %c3_i32 = arith.constant 3 : i32
    %9 = vector.broadcast %c3_i32 : i32 to vector<16x128xi32>
    %10 = arith.muli %8, %9 : vector<16x128xi32>
    %11 = vector.broadcast %5 : i32 to vector<16x128xi32>
    %12 = arith.addi %10, %11 : vector<16x128xi32>
    %c0_i32 = arith.constant 0 : i32
    %13 = vector.broadcast %c0_i32 : i32 to vector<16x128xi32>
    %c0_i32_0 = arith.constant 0 : i32
    %14 = vector.broadcast %c0_i32_0 : i32 to vector<16x128xi32>
    %15 = arith.addi %12, %14 : vector<16x128xi32>
    %c61_i32 = arith.constant 61 : i32
    %16 = vector.broadcast %c61_i32 : i32 to vector<16x128xi32>
    %17 = arith.xori %15, %16 : vector<16x128xi32>
    %c16_i32_1 = arith.constant 16 : i32
    %18 = vector.broadcast %c16_i32_1 : i32 to vector<16x128xi32>
    %19 = arith.shrui %15, %18 : vector<16x128xi32>
    %20 = arith.xori %17, %19 : vector<16x128xi32>
    %c9_i32 = arith.constant 9 : i32
    %21 = vector.broadcast %c9_i32 : i32 to vector<16x128xi32>
    %22 = arith.muli %20, %21 : vector<16x128xi32>
    %c4_i32 = arith.constant 4 : i32
    %23 = vector.broadcast %c4_i32 : i32 to vector<16x128xi32>
    %24 = arith.shrui %22, %23 : vector<16x128xi32>
    %25 = arith.xori %22, %24 : vector<16x128xi32>
    %c668265261_i32 = arith.constant 668265261 : i32
    %26 = vector.broadcast %c668265261_i32 : i32 to vector<16x128xi32>
    %27 = arith.muli %25, %26 : vector<16x128xi32>
    %c15_i32 = arith.constant 15 : i32
    %28 = vector.broadcast %c15_i32 : i32 to vector<16x128xi32>
    %29 = arith.shrui %27, %28 : vector<16x128xi32>
    %30 = arith.xori %27, %29 : vector<16x128xi32>
    %c65535_i32 = arith.constant 65535 : i32
    %31 = vector.broadcast %c65535_i32 : i32 to vector<16x128xi32>
    %32 = arith.andi %30, %31 : vector<16x128xi32>
    %33 = arith.addi %13, %32 : vector<16x128xi32>
    %c16_i32_2 = arith.constant 16 : i32
    %34 = vector.broadcast %c16_i32_2 : i32 to vector<16x128xi32>
    %35 = arith.shrui %30, %34 : vector<16x128xi32>
    %36 = arith.addi %33, %35 : vector<16x128xi32>
    %c1_i32 = arith.constant 1 : i32
    %37 = vector.broadcast %c1_i32 : i32 to vector<16x128xi32>
    %38 = arith.addi %12, %37 : vector<16x128xi32>
    %c61_i32_3 = arith.constant 61 : i32
    %39 = vector.broadcast %c61_i32_3 : i32 to vector<16x128xi32>
    %40 = arith.xori %38, %39 : vector<16x128xi32>
    %c16_i32_4 = arith.constant 16 : i32
    %41 = vector.broadcast %c16_i32_4 : i32 to vector<16x128xi32>
    %42 = arith.shrui %38, %41 : vector<16x128xi32>
    %43 = arith.xori %40, %42 : vector<16x128xi32>
    %c9_i32_5 = arith.constant 9 : i32
    %44 = vector.broadcast %c9_i32_5 : i32 to vector<16x128xi32>
    %45 = arith.muli %43, %44 : vector<16x128xi32>
    %c4_i32_6 = arith.constant 4 : i32
    %46 = vector.broadcast %c4_i32_6 : i32 to vector<16x128xi32>
    %47 = arith.shrui %45, %46 : vector<16x128xi32>
    %48 = arith.xori %45, %47 : vector<16x128xi32>
    %c668265261_i32_7 = arith.constant 668265261 : i32
    %49 = vector.broadcast %c668265261_i32_7 : i32 to vector<16x128xi32>
    %50 = arith.muli %48, %49 : vector<16x128xi32>
    %c15_i32_8 = arith.constant 15 : i32
    %51 = vector.broadcast %c15_i32_8 : i32 to vector<16x128xi32>
    %52 = arith.shrui %50, %51 : vector<16x128xi32>
    %53 = arith.xori %50, %52 : vector<16x128xi32>
    %c65535_i32_9 = arith.constant 65535 : i32
    %54 = vector.broadcast %c65535_i32_9 : i32 to vector<16x128xi32>
    %55 = arith.andi %53, %54 : vector<16x128xi32>
    %56 = arith.addi %36, %55 : vector<16x128xi32>
    %c16_i32_10 = arith.constant 16 : i32
    %57 = vector.broadcast %c16_i32_10 : i32 to vector<16x128xi32>
    %58 = arith.shrui %53, %57 : vector<16x128xi32>
    %59 = arith.addi %56, %58 : vector<16x128xi32>
    %c2_i32 = arith.constant 2 : i32
    %60 = vector.broadcast %c2_i32 : i32 to vector<16x128xi32>
    %61 = arith.addi %12, %60 : vector<16x128xi32>
    %c61_i32_11 = arith.constant 61 : i32
    %62 = vector.broadcast %c61_i32_11 : i32 to vector<16x128xi32>
    %63 = arith.xori %61, %62 : vector<16x128xi32>
    %c16_i32_12 = arith.constant 16 : i32
    %64 = vector.broadcast %c16_i32_12 : i32 to vector<16x128xi32>
    %65 = arith.shrui %61, %64 : vector<16x128xi32>
    %66 = arith.xori %63, %65 : vector<16x128xi32>
    %c9_i32_13 = arith.constant 9 : i32
    %67 = vector.broadcast %c9_i32_13 : i32 to vector<16x128xi32>
    %68 = arith.muli %66, %67 : vector<16x128xi32>
    %c4_i32_14 = arith.constant 4 : i32
    %69 = vector.broadcast %c4_i32_14 : i32 to vector<16x128xi32>
    %70 = arith.shrui %68, %69 : vector<16x128xi32>
    %71 = arith.xori %68, %70 : vector<16x128xi32>
    %c668265261_i32_15 = arith.constant 668265261 : i32
    %72 = vector.broadcast %c668265261_i32_15 : i32 to vector<16x128xi32>
    %73 = arith.muli %71, %72 : vector<16x128xi32>
    %c15_i32_16 = arith.constant 15 : i32
    %74 = vector.broadcast %c15_i32_16 : i32 to vector<16x128xi32>
    %75 = arith.shrui %73, %74 : vector<16x128xi32>
    %76 = arith.xori %73, %75 : vector<16x128xi32>
    %c65535_i32_17 = arith.constant 65535 : i32
    %77 = vector.broadcast %c65535_i32_17 : i32 to vector<16x128xi32>
    %78 = arith.andi %76, %77 : vector<16x128xi32>
    %79 = arith.addi %59, %78 : vector<16x128xi32>
    %c16_i32_18 = arith.constant 16 : i32
    %80 = vector.broadcast %c16_i32_18 : i32 to vector<16x128xi32>
    %81 = arith.shrui %76, %80 : vector<16x128xi32>
    %82 = arith.addi %79, %81 : vector<16x128xi32>
    %83 = arith.sitofp %82 : vector<16x128xi32> to vector<16x128xf32>
    %cst = arith.constant 2.15791871E-7 : f32
    %84 = vector.broadcast %cst : f32 to vector<16x128xf32>
    %85 = arith.mulf %83, %84 : vector<16x128xf32>
    %cst_19 = arith.constant -0.0424257591 : f32
    %86 = vector.broadcast %cst_19 : f32 to vector<16x128xf32>
    %87 = arith.addf %85, %86 : vector<16x128xf32>
    %c0_20 = arith.constant 0 : index
    %c0_21 = arith.constant 0 : index
    %88 = vector.load %arg2[%c0_20, %c0_21] : memref<16x128xf32, #tpu.memory_space<vmem>>, vector<16x128xf32>
    tpu.vector_store %arg2[%c0_20, %c0_21], %87 {strides = array<i32>} : memref<16x128xf32, #tpu.memory_space<vmem>>, vector<16x128xf32>,
    return
  }
  func.func @transform_0(%arg0: i32, %arg1: memref<1xi32, #tpu.memory_space<smem>>) -> (i32, i32) {
    %c0_i32 = arith.constant 0 : i32
    %c0_i32_0 = arith.constant 0 : i32
    return %arg0, %c0_i32 : i32, i32
  }
}

</mosaic_0001>

<bundles_post_ra>
// kernel: tpu_custom_call.1
= control target key start
LH: loop header
LB: loop body
LE: loop exit
PB: predicated region body
PF: predicated region fallthrough
CT: control target
= control target key end

     0   :  { %v8_v0 = vlaneseq  ;;  %s186_s0 = inlined_call_operand.<no memory space> [shape: s32[1], index: 0, kind: input, shape index: {}]   ;;  %s187_s1 = inlined_call_operand.hbm [shape: f32[16,128], index: 1, kind: output, shape index: {}]  }
   0x1   :  { %7 = vsyncpa [#allocation5], 0  ;;  %v24_v7 = vstv %s186_s0  ;;  %s158_s0 = smov [#allocation4]  }
   0x2   :  { %v9_v1 = vshrl.u32 %v8_v0, 7  ;;  %v16_v2 = vand.u32 127, %v8_v0  ;;  %s120_s8 = sshll.u32 %s158_s0, 4  ;;  %s121_s8 = int_to_ptr.vmem [resolvable:$true] %s120_s8 }
   0x3   :  { %s134_s9 = scalar_lea.vmem %s121_s8, 256  ;;  %p139_p1 = scmp.lt.s32.totalorder %s121_s8, %s121_s8 }
   0x4   :  { %v18_v3 = vmul.u32 128, %v9_v1  ;;  %v10_v4 = vadd.s32 8, %v9_v1  ;;  %p135_p0 = scmp.ne.s32.totalorder %s121_s8, %s134_s9  ;;  %p140_p2 = scmp.lt.s32.totalorder %s134_s9, %s134_s9 }
   0x6   :  { %v20_v5 = vadd.s32 %v18_v3, %v16_v2  ;;  %v19_v6 = vmul.u32 128, %v10_v4  ;;  %p141_p3 = por %p140_p2, %p139_p1 }
   0x8   :  { %v22_v8 = vmul.u32 3, %v20_v5  ;;  %v21_v9 = vadd.s32 %v19_v6, %v16_v2  ;;  %p142_p4 = pnand %p141_p3, %p135_p0 }
   0xa   :  { %v25_v10 = vadd.s32 %v24_v7, %v22_v8  ;;  %v23_v11 = vmul.u32 3, %v21_v9 }
   0xc   :  { %v27_v12 = vxor.u32 61, %v25_v10  ;;  %v29_v13 = vshrl.u32 %v25_v10, 16  ;;  %v51_v14 = vadd.s32 1, %v25_v10  ;;  %v79_v15 = vadd.s32 2, %v25_v10 }
   0xd   :  { %v26_v16 = vadd.s32 %v24_v7, %v23_v11 }
   0xe   :  { %v31_v17 = vxor.u32 %v29_v13, %v27_v12  ;;  %v53_v18 = vxor.u32 61, %v51_v14  ;;  %v55_v19 = vshrl.u32 %v51_v14, 16  ;;  %v81_v20 = vxor.u32 61, %v79_v15 }
   0xf   :  { %v83_v21 = vshrl.u32 %v79_v15, 16  ;;  %v28_v22 = vxor.u32 61, %v26_v16  ;;  %v30_v23 = vshrl.u32 %v26_v16, 16  ;;  %v52_v24 = vadd.s32 1, %v26_v16 }
  0x10   :  { %v33_v25 = vmul.u32 9, %v31_v17  ;;  %v57_v26 = vxor.u32 %v55_v19, %v53_v18  ;;  %v80_v27 = vadd.s32 2, %v26_v16 }
  0x11   :  { %v85_v28 = vxor.u32 %v83_v21, %v81_v20  ;;  %v32_v29 = vxor.u32 %v30_v23, %v28_v22  ;;  %v54_v30 = vxor.u32 61, %v52_v24  ;;  %v56_v31 = vshrl.u32 %v52_v24, 16 }
  0x12   :  { %v35_v32 = vshrl.u32 %v33_v25, 4  ;;  %v59_v33 = vmul.u32 9, %v57_v26  ;;  %v82_v34 = vxor.u32 61, %v80_v27  ;;  %v84_v35 = vshrl.u32 %v80_v27, 16 }
  0x13   :  { %v87_v36 = vmul.u32 9, %v85_v28  ;;  %v34_v37 = vmul.u32 9, %v32_v29  ;;  %v58_v38 = vxor.u32 %v56_v31, %v54_v30 }
  0x14   :  { %v37_v39 = vxor.u32 %v35_v32, %v33_v25  ;;  %v61_v40 = vshrl.u32 %v59_v33, 4  ;;  %v86_v41 = vxor.u32 %v84_v35, %v82_v34 }
  0x15   :  { %v89_v42 = vshrl.u32 %v87_v36, 4  ;;  %v36_v43 = vshrl.u32 %v34_v37, 4  ;;  %v60_v44 = vmul.u32 9, %v58_v38 }
  0x16   :  { %v39_v45 = vmul.u32 668265261, %v37_v39  ;;  %v63_v46 = vxor.u32 %v61_v40, %v59_v33  ;;  %v88_v47 = vmul.u32 9, %v86_v41 }
  0x17   :  { %v91_v48 = vxor.u32 %v89_v42, %v87_v36  ;;  %v38_v49 = vxor.u32 %v36_v43, %v34_v37  ;;  %v62_v50 = vshrl.u32 %v60_v44, 4 }
  0x18   :  { %v41_v51 = vshrl.u32 %v39_v45, 15  ;;  %v65_v52 = vmul.u32 668265261, %v63_v46  ;;  %v90_v53 = vshrl.u32 %v88_v47, 4 }
  0x19   :  { %v93_v54 = vmul.u32 668265261, %v91_v48  ;;  %v40_v55 = vmul.u32 668265261, %v38_v49  ;;  %v64_v56 = vxor.u32 %v62_v50, %v60_v44 }
  0x1a   :  { %v43_v57 = vxor.u32 %v41_v51, %v39_v45  ;;  %v67_v58 = vshrl.u32 %v65_v52, 15  ;;  %v92_v59 = vxor.u32 %v90_v53, %v88_v47 }
  0x1b   :  { %v95_v60 = vshrl.u32 %v93_v54, 15  ;;  %v42_v61 = vshrl.u32 %v40_v55, 15  ;;  %v66_v62 = vmul.u32 668265261, %v64_v56 }
  0x1c   :  { %v45_v63 = vand.u32 65535, %v43_v57  ;;  %v47_v0 = vshrl.u32 %v43_v57, 16  ;;  %v69_v1 = vxor.u32 %v67_v58, %v65_v52  ;;  %v94_v2 = vmul.u32 668265261, %v92_v59 }
  0x1d   :  { %v97_v3 = vxor.u32 %v95_v60, %v93_v54  ;;  %v44_v4 = vxor.u32 %v42_v61, %v40_v55  ;;  %v68_v5 = vshrl.u32 %v66_v62, 15 }
  0x1e   :  { %v49_v6 = vadd.s32 %v47_v0, %v45_v63  ;;  %v71_v7 = vand.u32 65535, %v69_v1  ;;  %v75_v8 = vshrl.u32 %v69_v1, 16  ;;  %v96_v9 = vshrl.u32 %v94_v2, 15 }
  0x1f   :  { %v46_v10 = vand.u32 65535, %v44_v4  ;;  %v48_v11 = vshrl.u32 %v44_v4, 16  ;;  %v99_v13 = vand.u32 65535, %v97_v3  ;;  %v70_v14 = vxor.u32 %v68_v5, %v66_v62 }
  0x20   :  { %v73_v12 = vadd.s32 %v71_v7, %v49_v6  ;;  %v98_v15 = vxor.u32 %v96_v9, %v94_v2  ;;  %v103_v18 = vshrl.u32 %v97_v3, 16 }
  0x21   :  { %v50_v16 = vadd.s32 %v48_v11, %v46_v10  ;;  %v72_v19 = vand.u32 65535, %v70_v14  ;;  %v76_v20 = vshrl.u32 %v70_v14, 16 }
  0x22   :  { %v77_v17 = vadd.s32 %v75_v8, %v73_v12  ;;  %v100_v23 = vand.u32 65535, %v98_v15  ;;  %v104_v26 = vshrl.u32 %v98_v15, 16 }
  0x23   :  { %v74_v22 = vadd.s32 %v72_v19, %v50_v16 }
  0x24   :  { %v101_v21 = vadd.s32 %v99_v13, %v77_v17 }
  0x25   :  { %v78_v25 = vadd.s32 %v76_v20, %v74_v22 }
  0x26   :  { %v105_v24 = vadd.s32 %v103_v18, %v101_v21 }
  0x27   :  { %v102_v28 = vadd.s32 %v100_v23, %v78_v25 }
  0x28   :  { %v107_v27 = vcvt.s32.f32 %v105_v24 }
  0x29   :  { %v106_v30 = vadd.s32 %v104_v26, %v102_v28 }
  0x2a   :  { %v109_v29 = vmul.f32 2.1579187e-07, %v107_v27 }
  0x2b   :  { %v108_v32 = vcvt.s32.f32 %v106_v30 }
  0x2c   :  { %v111_v31 = vadd.f32 -0.04242576, %v109_v29 }
  0x2d   :  { %v110_v33 = vmul.f32 2.1579187e-07, %v108_v32 }
  0x2e   :  { %113 = vst [vmem:[#allocation4] sm:$0xff] %v111_v31 }
  0x2f   :  { %v112_v34 = vadd.f32 -0.04242576, %v110_v33 }
  0x31   :  { %114 = vst [vmem:[#allocation4 + $0x8] sm:$0xff] %v112_v34 }
  0x32   :  { %145 = shalt.err (!%p142_p4)
}
  0x33   :  { %s146_s12 = scalar_lea.hbm %s187_s1, 256 }
  0x34   :  { %p147_p5 = scmp.ne.s32.totalorder %s187_s1, %s146_s12  ;;  %p150_p6 = scmp.lt.u32.totalorder %s146_s12, %s187_s1 }
  0x36   :  { %p152_p7 = pnand %p150_p6, %p147_p5 }
  0x38   :  { %155 = shalt.err (!%p152_p7)
}
  0x39   :  { %s159_s17 = smov 128   ;;  %s160_s18 = smov 8  }
  0x3a   :  { %126 = dma.vmem_to_hbm [thread:$0]  %s121_s8, 256, %s187_s1, [#allocation5], %s159_s17, %s159_s17, %s160_s18  }
  0x3b   :  { %156 = dma.done.wait [#allocation5], 256  }
  0x3c   :  { %157 = vsyncadd [#allocation5], 4294967040 }
  0x3d   :  { %130 = vsyncpa [#allocation5], 1 }

</bundles_post_ra>
